<compile_context>
chip_gen: v7x
topology: tpu7x:2x2x1
jax: 0.10.0
libtpu: 0.0.40
codegen_flags: <defaults>
</compile_context>

<pallas_src>
import functools

import jax
import jax.numpy as jnp
import numpy as np
from jax import lax
from jax.experimental import pallas as pl
from jax.experimental.pallas import tpu as pltpu


def _leaky_relu(x, slope=0.2):
    return jnp.where(x > 0, x, slope * x)


def disc_res_kernel(x_ref, m1_ref, b1_ref, m2_ref, b2_ref, o_ref, *, H):
    """Whole problem resident in VMEM (no grid).

    x_ref : (N*H, W*C)     lane-dense activations (row r = image n, height h)
    m*_ref: (3, W*C, W*C)  per-kh banded conv matrices (kw shift + channel mix)
    b*_ref: (1, W*C)       bias, tiled along W
    o_ref : (N*H, W*C)
    """
    R, L = x_ref.shape
    x = x_ref[...]

    # Row masks: rows whose "row above"/"row below" falls outside the image
    # (top/bottom zero padding and the seams between folded batch images).
    h_idx = lax.broadcasted_iota(jnp.int32, (R, L), 0) % H
    has_above = h_idx != 0
    has_below = h_idx != (H - 1)

    def conv3x3(a, m_ref, b_ref):
        # kh = 1: no row shift
        acc = jnp.dot(a, m_ref[1], preferred_element_type=jnp.float32)
        # kh = 0: row above (roll down by one, mask image-top rows)
        up = jnp.where(has_above, pltpu.roll(a, shift=1, axis=0), 0.0)
        acc = acc + jnp.dot(up, m_ref[0], preferred_element_type=jnp.float32)
        # kh = 2: row below (roll up by one, mask image-bottom rows)
        dn = jnp.where(has_below, pltpu.roll(a, shift=R - 1, axis=0), 0.0)
        acc = acc + jnp.dot(dn, m_ref[2], preferred_element_type=jnp.float32)
        return acc + b_ref[...]        # bias added once, at the end

    a1 = _leaky_relu(x)
    y1 = conv3x3(a1, m1_ref, b1_ref)
    a2 = _leaky_relu(y1)
    y2 = conv3x3(a2, m2_ref, b2_ref)
    o_ref[...] = x + y2                # residual uses the pre-activation input


def _band_weights(w_oihw, width):
    """OIHW (C,C,3,3) -> (3, width*C, width*C) banded matrices.

    M[kh][w_in*C + ci, w_out*C + co] = w[co, ci, kh, kw] with
    kw = w_in - w_out + 1 if it lies in {0,1,2}, else 0; SAME zero padding
    along W is therefore built into the matrix itself.
    """
    mats = []
    for kh in range(3):
        m = 0.0
        for kw in range(3):
            band = jnp.eye(width, k=1 - kw, dtype=jnp.float32)  # w_out = w_in + 1 - kw
            m = m + jnp.kron(band, jnp.transpose(w_oihw[:, :, kh, kw]))
        mats.append(m)
    return jnp.stack(mats)


def disc_res_forward(x_nchw, w1, b1, w2, b2):
    """x_nchw: (N, C, H, W) f32; w*: (C, C, 3, 3) OIHW; b*: (C,)."""
    N, C, H, W = x_nchw.shape
    L = W * C

    # Glue: NCHW -> lane-dense (N*H, W*C).  (A surrounding model could keep
    # this layout end-to-end and skip the transposes entirely.)
    x2 = jnp.transpose(x_nchw, (0, 2, 3, 1)).reshape(N * H, L)
    m1 = _band_weights(w1, W)
    m2 = _band_weights(w2, W)
    b1v = jnp.tile(b1.astype(jnp.float32), W).reshape(1, L)
    b2v = jnp.tile(b2.astype(jnp.float32), W).reshape(1, L)

    vmem = pl.BlockSpec(memory_space=pltpu.MemorySpace.VMEM)
    out = pl.pallas_call(
        functools.partial(disc_res_kernel, H=H),
        out_shape=jax.ShapeDtypeStruct((N * H, L), jnp.float32),
        in_specs=[vmem] * 5,
        out_specs=vmem,
    )(x2, m1, b1v, m2, b2v)

    return jnp.transpose(out.reshape(N, H, W, C), (0, 3, 1, 2))  # back to NCHW


def disc_res_reference(x_nchw, w1, b1, w2, b2):
    """Pure-JAX reference matching the PyTorch forward."""
    def conv(t, w, b):
        y = lax.conv_general_dilated(
            t, w, window_strides=(1, 1), padding="SAME",
            dimension_numbers=("NCHW", "OIHW", "NCHW"))
        return y + b[None, :, None, None]

    a = _leaky_relu(x_nchw)
    y = conv(a, w1, b1)
    y = _leaky_relu(y)
    y = conv(y, w2, b2)
    return x_nchw + y


if __name__ == "__main__":
    # DiscRes(nf=8): batch=2, nf=8 channels, 16x16 spatial -> W*C = 128 lanes.
    N, C, H, W = 2, 8, 16, 16
    key = jax.random.PRNGKey(0)
    kx, kw1, kb1, kw2, kb2 = jax.random.split(key, 5)

    x = jax.random.normal(kx, (N, C, H, W), dtype=jnp.float32)
    fan_in = C * 3 * 3
    scale = 1.0 / np.sqrt(fan_in)
    w1 = jax.random.uniform(kw1, (C, C, 3, 3), jnp.float32, -scale, scale)
    b1 = jax.random.uniform(kb1, (C,), jnp.float32, -scale, scale)
    w2 = jax.random.uniform(kw2, (C, C, 3, 3), jnp.float32, -scale, scale)
    b2 = jax.random.uniform(kb2, (C,), jnp.float32, -scale, scale)

    out = jax.block_until_ready(disc_res_forward(x, w1, b1, w2, b2))
    ref = jax.block_until_ready(disc_res_reference(x, w1, b1, w2, b2))

    np.testing.assert_allclose(np.asarray(out), np.asarray(ref),
                               rtol=1e-4, atol=1e-4)
    print("KERNEL_OK")
</pallas_src>

<mosaic_0001>
module attributes {stable_mosaic.version = 11 : i64} {
  func.func @disc_res_kernel(%arg0: memref<32x128xf32, #tpu.memory_space<vmem>>, %arg1: memref<3x128x128xf32, #tpu.memory_space<vmem>>, %arg2: memref<1x128xf32, #tpu.memory_space<vmem>>, %arg3: memref<3x128x128xf32, #tpu.memory_space<vmem>>, %arg4: memref<1x128xf32, #tpu.memory_space<vmem>>, %arg5: memref<32x128xf32, #tpu.memory_space<vmem>>) attributes {dimension_semantics = [], scalar_prefetch = 0 : i64, scratch_operands = 0 : i64, tpu.core_type = #tpu.core_type<tc>} {
    %c0 = arith.constant 0 : index
    %c0_0 = arith.constant 0 : index
    %0 = vector.load %arg0[%c0, %c0_0] : memref<32x128xf32, #tpu.memory_space<vmem>>, vector<32x128xf32>
    %1 = tpu.iota {dimensions = array<i32: 0>} : vector<32x128xi32>
    %c16_i32 = arith.constant 16 : i32
    %c0_i32 = arith.constant 0 : i32
    %2 = arith.cmpi eq, %c16_i32, %c0_i32 : i32
    %c1_i32 = arith.constant 1 : i32
    %3 = arith.select %2, %c1_i32, %c16_i32 : i32
    %4 = vector.broadcast %3 : i32 to vector<32x128xi32>
    %5 = arith.remsi %1, %4 : vector<32x128xi32>
    %c0_i32_1 = arith.constant 0 : i32
    %6 = vector.broadcast %c0_i32_1 : i32 to vector<32x128xi32>
    %7 = arith.cmpi ne, %5, %6 : vector<32x128xi32>
    %c0_i32_2 = arith.constant 0 : i32
    %8 = vector.broadcast %c0_i32_2 : i32 to vector<32x128xi32>
    %9 = arith.cmpi slt, %5, %8 : vector<32x128xi32>
    %c0_i32_3 = arith.constant 0 : i32
    %10 = arith.cmpi slt, %3, %c0_i32_3 : i32
    %11 = vector.broadcast %10 : i1 to vector<32x128xi1>
    %12 = vector.broadcast %11 : vector<32x128xi1> to vector<32x128xi1>
    %13 = arith.xori %9, %12 : vector<32x128xi1>
    %14 = arith.andi %13, %7 : vector<32x128xi1>
    %15 = vector.broadcast %3 : i32 to vector<32x128xi32>
    %16 = arith.addi %5, %15 : vector<32x128xi32>
    %17 = arith.select %14, %16, %5 : vector<32x128xi1>, vector<32x128xi32>
    %c0_i32_4 = arith.constant 0 : i32
    %18 = vector.broadcast %c0_i32_4 : i32 to vector<32x128xi32>
    %19 = arith.cmpi ne, %17, %18 : vector<32x128xi32>
    %c15_i32 = arith.constant 15 : i32
    %20 = vector.broadcast %c15_i32 : i32 to vector<32x128xi32>
    %21 = arith.cmpi ne, %17, %20 : vector<32x128xi32>
    %cst = arith.constant 0.000000e+00 : f32
    %22 = vector.broadcast %cst : f32 to vector<32x128xf32>
    %23 = arith.cmpf ogt, %0, %22 : vector<32x128xf32>
    %cst_5 = arith.constant 2.000000e-01 : f32
    %24 = vector.broadcast %cst_5 : f32 to vector<32x128xf32>
    %25 = arith.mulf %24, %0 : vector<32x128xf32>
    %26 = arith.select %23, %0, %25 : vector<32x128xi1>, vector<32x128xf32>
    %c1 = arith.constant 1 : index
    %c0_6 = arith.constant 0 : index
    %c0_7 = arith.constant 0 : index
    %27 = vector.load %arg1[%c1, %c0_6, %c0_7] : memref<3x128x128xf32, #tpu.memory_space<vmem>>, vector<1x128x128xf32>
    %28 = vector.shape_cast %27 : vector<1x128x128xf32> to vector<128x128xf32>
    %cst_8 = arith.constant dense<0.000000e+00> : vector<32x128xf32>
    %29 = tpu.matmul %26, %28, %cst_8 {dimension_numbers = #tpu.dot_dimension_numbers<[1], [0], [0], [1], [0, 0, 1, 1], [], []>} : vector<32x128xf32>, vector<128x128xf32>, vector<32x128xf32> -> vector<32x128xf32>
    %c1_i32_9 = arith.constant 1 : i32
    %30 = tpu.dynamic_rotate %26 by %c1_i32_9 dim 0 : vector<32x128xf32>, i32 -> vector<32x128xf32>
    %cst_10 = arith.constant 0.000000e+00 : f32
    %31 = vector.broadcast %cst_10 : f32 to vector<32x128xf32>
    %32 = arith.select %19, %30, %31 : vector<32x128xi1>, vector<32x128xf32>
    %c0_11 = arith.constant 0 : index
    %c0_12 = arith.constant 0 : index
    %c0_13 = arith.constant 0 : index
    %33 = vector.load %arg1[%c0_11, %c0_12, %c0_13] : memref<3x128x128xf32, #tpu.memory_space<vmem>>, vector<1x128x128xf32>
    %34 = vector.shape_cast %33 : vector<1x128x128xf32> to vector<128x128xf32>
    %cst_14 = arith.constant dense<0.000000e+00> : vector<32x128xf32>
    %35 = tpu.matmul %32, %34, %cst_14 {dimension_numbers = #tpu.dot_dimension_numbers<[1], [0], [0], [1], [0, 0, 1, 1], [], []>} : vector<32x128xf32>, vector<128x128xf32>, vector<32x128xf32> -> vector<32x128xf32>
    %36 = arith.addf %29, %35 : vector<32x128xf32>
    %c31_i32 = arith.constant 31 : i32
    %37 = tpu.dynamic_rotate %26 by %c31_i32 dim 0 : vector<32x128xf32>, i32 -> vector<32x128xf32>
    %cst_15 = arith.constant 0.000000e+00 : f32
    %38 = vector.broadcast %cst_15 : f32 to vector<32x128xf32>
    %39 = arith.select %21, %37, %38 : vector<32x128xi1>, vector<32x128xf32>
    %c2 = arith.constant 2 : index
    %c0_16 = arith.constant 0 : index
    %c0_17 = arith.constant 0 : index
    %40 = vector.load %arg1[%c2, %c0_16, %c0_17] : memref<3x128x128xf32, #tpu.memory_space<vmem>>, vector<1x128x128xf32>
    %41 = vector.shape_cast %40 : vector<1x128x128xf32> to vector<128x128xf32>
    %cst_18 = arith.constant dense<0.000000e+00> : vector<32x128xf32>
    %42 = tpu.matmul %39, %41, %cst_18 {dimension_numbers = #tpu.dot_dimension_numbers<[1], [0], [0], [1], [0, 0, 1, 1], [], []>} : vector<32x128xf32>, vector<128x128xf32>, vector<32x128xf32> -> vector<32x128xf32>
    %43 = arith.addf %36, %42 : vector<32x128xf32>
    %c0_19 = arith.constant 0 : index
    %c0_20 = arith.constant 0 : index
    %44 = vector.load %arg2[%c0_19, %c0_20] : memref<1x128xf32, #tpu.memory_space<vmem>>, vector<1x128xf32>
    %45 = vector.broadcast %44 : vector<1x128xf32> to vector<32x128xf32>
    %46 = arith.addf %43, %45 : vector<32x128xf32>
    %cst_21 = arith.constant 0.000000e+00 : f32
    %47 = vector.broadcast %cst_21 : f32 to vector<32x128xf32>
    %48 = arith.cmpf ogt, %46, %47 : vector<32x128xf32>
    %cst_22 = arith.constant 2.000000e-01 : f32
    %49 = vector.broadcast %cst_22 : f32 to vector<32x128xf32>
    %50 = arith.mulf %49, %46 : vector<32x128xf32>
    %51 = arith.select %48, %46, %50 : vector<32x128xi1>, vector<32x128xf32>
    %c1_23 = arith.constant 1 : index
    %c0_24 = arith.constant 0 : index
    %c0_25 = arith.constant 0 : index
    %52 = vector.load %arg3[%c1_23, %c0_24, %c0_25] : memref<3x128x128xf32, #tpu.memory_space<vmem>>, vector<1x128x128xf32>
    %53 = vector.shape_cast %52 : vector<1x128x128xf32> to vector<128x128xf32>
    %cst_26 = arith.constant dense<0.000000e+00> : vector<32x128xf32>
    %54 = tpu.matmul %51, %53, %cst_26 {dimension_numbers = #tpu.dot_dimension_numbers<[1], [0], [0], [1], [0, 0, 1, 1], [], []>} : vector<32x128xf32>, vector<128x128xf32>, vector<32x128xf32> -> vector<32x128xf32>
    %c1_i32_27 = arith.constant 1 : i32
    %55 = tpu.dynamic_rotate %51 by %c1_i32_27 dim 0 : vector<32x128xf32>, i32 -> vector<32x128xf32>
    %cst_28 = arith.constant 0.000000e+00 : f32
    %56 = vector.broadcast %cst_28 : f32 to vector<32x128xf32>
    %57 = arith.select %19, %55, %56 : vector<32x128xi1>, vector<32x128xf32>
    %c0_29 = arith.constant 0 : index
    %c0_30 = arith.constant 0 : index
    %c0_31 = arith.constant 0 : index
    %58 = vector.load %arg3[%c0_29, %c0_30, %c0_31] : memref<3x128x128xf32, #tpu.memory_space<vmem>>, vector<1x128x128xf32>
    %59 = vector.shape_cast %58 : vector<1x128x128xf32> to vector<128x128xf32>
    %cst_32 = arith.constant dense<0.000000e+00> : vector<32x128xf32>
    %60 = tpu.matmul %57, %59, %cst_32 {dimension_numbers = #tpu.dot_dimension_numbers<[1], [0], [0], [1], [0, 0, 1, 1], [], []>} : vector<32x128xf32>, vector<128x128xf32>, vector<32x128xf32> -> vector<32x128xf32>
    %61 = arith.addf %54, %60 : vector<32x128xf32>
    %c31_i32_33 = arith.constant 31 : i32
    %62 = tpu.dynamic_rotate %51 by %c31_i32_33 dim 0 : vector<32x128xf32>, i32 -> vector<32x128xf32>
    %cst_34 = arith.constant 0.000000e+00 : f32
    %63 = vector.broadcast %cst_34 : f32 to vector<32x128xf32>
    %64 = arith.select %21, %62, %63 : vector<32x128xi1>, vector<32x128xf32>
    %c2_35 = arith.constant 2 : index
    %c0_36 = arith.constant 0 : index
    %c0_37 = arith.constant 0 : index
    %65 = vector.load %arg3[%c2_35, %c0_36, %c0_37] : memref<3x128x128xf32, #tpu.memory_space<vmem>>, vector<1x128x128xf32>
    %66 = vector.shape_cast %65 : vector<1x128x128xf32> to vector<128x128xf32>
    %cst_38 = arith.constant dense<0.000000e+00> : vector<32x128xf32>
    %67 = tpu.matmul %64, %66, %cst_38 {dimension_numbers = #tpu.dot_dimension_numbers<[1], [0], [0], [1], [0, 0, 1, 1], [], []>} : vector<32x128xf32>, vector<128x128xf32>, vector<32x128xf32> -> vector<32x128xf32>
    %68 = arith.addf %61, %67 : vector<32x128xf32>
    %c0_39 = arith.constant 0 : index
    %c0_40 = arith.constant 0 : index
    %69 = vector.load %arg4[%c0_39, %c0_40] : memref<1x128xf32, #tpu.memory_space<vmem>>, vector<1x128xf32>
    %70 = vector.broadcast %69 : vector<1x128xf32> to vector<32x128xf32>
    %71 = arith.addf %68, %70 : vector<32x128xf32>
    %72 = arith.addf %0, %71 : vector<32x128xf32>
    %c0_41 = arith.constant 0 : index
    %c0_42 = arith.constant 0 : index
    %73 = vector.load %arg5[%c0_41, %c0_42] : memref<32x128xf32, #tpu.memory_space<vmem>>, vector<32x128xf32>
    tpu.vector_store %arg5[%c0_41, %c0_42], %72 {strides = array<i32>} : memref<32x128xf32, #tpu.memory_space<vmem>>, vector<32x128xf32>,
    return
  }
}

</mosaic_0001>

<bundles_post_ra>
// kernel: tpu_custom_call.1
= control target key start
LH: loop header
LB: loop body
LE: loop exit
PB: predicated region body
PF: predicated region fallthrough
CT: control target
= control target key end

     0   :  { %10 = vsyncpa [#allocation3], 0  ;;  %s1788_s0 = inlined_call_operand.hbm [shape: f32[32,128], index: 0, kind: input, shape index: {}]   ;;  %s1789_s1 = inlined_call_operand.hbm [shape: f32[3,128,128], index: 1, kind: input, shape index: {}]   ;;  %s1790_s2 = inlined_call_operand.vmem [shape: f32[1,128], index: 2, kind: input, shape index: {}]   ;;  %s1791_s3 = inlined_call_operand.hbm [shape: f32[3,128,128], index: 3, kind: input, shape index: {}]   ;;  %s1792_s4 = inlined_call_operand.vmem [shape: f32[1,128], index: 4, kind: input, shape index: {}]   ;;  %s1793_s5 = inlined_call_operand.hbm [shape: f32[32,128], index: 5, kind: output, shape index: {}]  }
   0x1   :  { %11 = vsyncpa [#allocation6], 0 }
   0x2   :  { %12 = vsyncpa [#allocation4], 0  ;;  %s1533_s18 = smov [#allocation5]   ;;  %s1534_s20 = smov [#allocation2]  }
   0x3   :  { %s30_s19 = sshll.u32 %s1533_s18, 4  ;;  %s18_s21 = sshll.u32 %s1534_s20, 4  ;;  %s31_s19 = int_to_ptr.vmem [resolvable:$true] %s30_s19  ;;  %s1569_s21 = int_to_ptr.vmem [resolvable:$true] %s18_s21 }
   0x4   :  { %s1439_s24 = scalar_lea.hbm %s1789_s1, 6144 }
   0x5   :  { %p1440_p0 = scmp.ne.s32.totalorder %s1789_s1, %s1439_s24  ;;  %p1443_p1 = scmp.lt.u32.totalorder %s1439_s24, %s1789_s1 }
   0x7   :  { %p1445_p2 = pnand %p1443_p1, %p1440_p0 }
   0x9   :  { %1448 = shalt.err (!%p1445_p2)
}
   0xa   :  { %s1449_s29 = scalar_lea.vmem %s31_s19, 6144  ;;  %p1454_p4 = scmp.lt.s32.totalorder %s31_s19, %s31_s19 }
   0xb   :  { %p1450_p3 = scmp.ne.s32.totalorder %s31_s19, %s1449_s29  ;;  %p1455_p5 = scmp.lt.s32.totalorder %s1449_s29, %s1449_s29 }
   0xd   :  { %p1456_p6 = por %p1455_p5, %p1454_p4 }
   0xf   :  { %p1457_p7 = pnand %p1456_p6, %p1450_p3 }
  0x11   :  { %1460 = shalt.err (!%p1457_p7)
}
  0x12   :  { %s1535_s30 = smov 128   ;;  %s1536_s6 = smov 8  }
  0x13   :  { %36 = dma.hbm_to_vmem [thread:$0]  %s1789_s1, 6144, %s31_s19, [#allocation6], %s1535_s30, %s1535_s30, %s1536_s6  }
  0x14   :  { %s1461_s11 = scalar_lea.hbm %s1788_s0, 512 }
  0x15   :  { %p1462_p8 = scmp.ne.s32.totalorder %s1788_s0, %s1461_s11  ;;  %p1465_p9 = scmp.lt.u32.totalorder %s1461_s11, %s1788_s0 }
  0x17   :  { %p1467_p10 = pnand %p1465_p9, %p1462_p8 }
  0x19   :  { %1470 = shalt.err (!%p1467_p10)
}
  0x1a   :  { %s1471_s16 = scalar_lea.vmem %s1569_s21, 512  ;;  %p1476_p12 = scmp.lt.s32.totalorder %s1569_s21, %s1569_s21 }
  0x1b   :  { %p1472_p11 = scmp.ne.s32.totalorder %s1569_s21, %s1471_s16  ;;  %p1477_p13 = scmp.lt.s32.totalorder %s1471_s16, %s1471_s16 }
  0x1d   :  { %p1478_p0 = por %p1477_p13, %p1476_p12 }
  0x1f   :  { %p1479_p1 = pnand %p1478_p0, %p1472_p11 }
  0x21   :  { %1482 = shalt.err (!%p1479_p1)
}
  0x22   :  { %24 = dma.hbm_to_vmem [thread:$0]  %s1788_s0, 512, %s1569_s21, [#allocation3], %s1535_s30, %s1535_s30, %s1536_s6  }
  0x23   :  { %s1537_s18 = smov [#allocation7]   ;;  %s1483_s23 = scalar_lea.hbm %s1791_s3, 6144 }
  0x24   :  { %s44_s19 = sshll.u32 %s1537_s18, 4  ;;  %p1484_p2 = scmp.ne.s32.totalorder %s1791_s3, %s1483_s23  ;;  %s45_s19 = int_to_ptr.vmem [resolvable:$true] %s44_s19 }
  0x25   :  { %p1487_p3 = scmp.lt.u32.totalorder %s1483_s23, %s1791_s3 }
  0x27   :  { %p1489_p4 = pnand %p1487_p3, %p1484_p2 }
  0x29   :  { %1492 = shalt.err (!%p1489_p4)
}
  0x2a   :  { %s1493_s28 = scalar_lea.vmem %s45_s19, 6144  ;;  %p1498_p6 = scmp.lt.s32.totalorder %s45_s19, %s45_s19 }
  0x2b   :  { %p1494_p5 = scmp.ne.s32.totalorder %s45_s19, %s1493_s28  ;;  %p1499_p7 = scmp.lt.s32.totalorder %s1493_s28, %s1493_s28 }
  0x2d   :  { %p1500_p8 = por %p1499_p7, %p1498_p6 }
  0x2f   :  { %p1501_p9 = pnand %p1500_p8, %p1494_p5 }
  0x31   :  { %1504 = shalt.err (!%p1501_p9)
}
  0x32   :  { %50 = dma.hbm_to_vmem [thread:$0]  %s1791_s3, 6144, %s45_s19, [#allocation6], %s1535_s30, %s1535_s30, %s1536_s6  }
  0x33   :  { %1527 = dma.done.wait [#allocation3], 512  }
  0x34   :  { %1528 = vsyncadd [#allocation3], 4294966784 }
  0x35   :  { %1529 = dma.done.wait [#allocation6], 12288  }
  0x36   :  { %1530 = vsyncadd [#allocation6], 4294955008  ;;  %v66_v0 = vlaneseq  ;;  %v169_v1 = vld [vmem:[#allocation5] sm:$0xff]  ;;  %v170_v2 = vld [vmem:[#allocation5 + $0x8] sm:$0xff]  ;;  %s1538_s8 = smov [#allocation8]  }
  0x37   :  { %v171_v3 = vld [vmem:[#allocation5 + $0x10] sm:$0xff]  ;;  %v1225_v4 = vpack.c.bf16 %v170_v2, %v169_v1  ;;  %v172_v5 = vld [vmem:[#allocation5 + $0x18] sm:$0xff]  ;;  %v173_v8 = vld [vmem:[#allocation5 + $0x20] sm:$0xff]  ;;  %s854_s9 = sshll.u32 %s1538_s8, 4  ;;  %s855_s9 = int_to_ptr.vmem [resolvable:$true] %s854_s9 }
  0x38   :  { %v1621_v6 = vshrl.u32 %v66_v0, 7  ;;  %v1229_v7 = vpack.c.bf16 %v172_v5, %v171_v3  ;;  %v174_v9 = vld [vmem:[#allocation5 + $0x28] sm:$0xff]  ;;  %v1623_v11 = vld [vmem:[#allocation2] sm:$0xff]  ;;  %v1625_v12 = vld [vmem:[#allocation2 + $0x18] sm:$0xff]  ;;  %p1510_p11 = scmp.lt.s32.totalorder %s855_s9, %s855_s9 }
  0x39   :  { %1226 = vmatprep.subr.bf16.mxu0 %v1225_v4  ;;  %v1233_v10 = vpack.c.bf16 %v174_v9, %v173_v8  ;;  %v175_v14 = vld [vmem:[#allocation5 + $0x30] sm:$0xff]  ;;  %v176_v15 = vld [vmem:[#allocation5 + $0x38] sm:$0xff]  ;;  %vm127_vm0 = vcmp.gt.f32.partialorder %v1623_v11, 0.0  ;;  %vm130_vm1 = vcmp.gt.f32.partialorder %v1625_v12, 0.0  ;;  %v131_v16 = vmul.f32 0.2, %v1623_v11 }
  0x3a   :  { %1228 = vmatpush3.bf16.msra.mxu0 %v1225_v4  ;;  %v75_v13 = vand.u32 15, %v1621_v6  ;;  %v134_v17 = vmul.f32 0.2, %v1625_v12  ;;  %v1237_v19 = vpack.c.bf16 %v176_v15, %v175_v14  ;;  %vm160_vm2 = vcmp.lt.s32.totalorder %v1621_v6, 1  ;;  %v177_v22 = vld [vmem:[#allocation5 + $0x40] sm:$0xff]  ;;  %v178_v23 = vld [vmem:[#allocation5 + $0x48] sm:$0xff] }
  0x3b   :  { %1230 = vmatprep.subr.bf16.mxu0 %v1229_v7  ;;  %v1633_v18 = vsel %vm127_vm0, %v1623_v11, %v131_v16  ;;  %v1241_v27 = vpack.c.bf16 %v178_v23, %v177_v22  ;;  %v179_v28 = vld [vmem:[#allocation5 + $0x50] sm:$0xff]  ;;  %v180_v29 = vld [vmem:[#allocation5 + $0x58] sm:$0xff]  ;;  %v181_v30 = vld [vmem:[#allocation5 + $0x60] sm:$0xff]  ;;  %v69_v53 = vadd.s32 16, %v1621_v6  ;;  %vm359_vm7 = vcmp.lt.s32.totalorder %v1621_v6, 7 }
  0x3c   :  { %v1636_v20 = vsel %vm130_vm1, %v1625_v12, %v134_v17  ;;  %v156_v21 = vrot.slane %v1633_v18, 7  ;;  %vm1640_vm3 = vcmp.ne.s32.totalorder %v75_v13, 0  ;;  %v1245_v31 = vpack.c.bf16 %v180_v29, %v179_v28  ;;  %v182_v32 = vld [vmem:[#allocation5 + $0x68] sm:$0xff]  ;;  %v526_v34 = vld [vmem:[#allocation7] sm:$0xff]  ;;  %v528_v36 = vld [vmem:[#allocation7 + $0x10] sm:$0xff] }
  0x3d   :  { %v159_v25 = vrot.slane %v1636_v20, 7  ;;  %v1653_v33 = vld [vmem:[#allocation2 + $0x8] sm:$0xff]  ;;  %v529_v37 = vld [vmem:[#allocation7 + $0x18] sm:$0xff]  ;;  %v1655_v38 = vld [vmem:[#allocation2 + $0x10] sm:$0xff]  ;;  %v1249_v43 = vpack.c.bf16 %v182_v32, %v181_v30  ;;  %v89_v62 = vand.u32 15, %v69_v53 }
  0x3e   :  { %1232 = vmatpush3.bf16.msra.mxu0 %v1229_v7  ;;  %v527_v35 = vld [vmem:[#allocation7 + $0x8] sm:$0xff]  ;;  %v1325_v40 = vpack.c.bf16 %v529_v37, %v528_v36  ;;  %v530_v41 = vld [vmem:[#allocation7 + $0x20] sm:$0xff]  ;;  %v132_v44 = vmul.f32 0.2, %v1653_v33  ;;  %v183_v45 = vld [vmem:[#allocation5 + $0x70] sm:$0xff]  ;;  %vm128_vm4 = vcmp.gt.f32.partialorder %v1653_v33, 0.0 }
  0x3f   :  { %1234 = vmatprep.subr.bf16.mxu0 %v1233_v10  ;;  %v164_v26 = vsel %vm160_vm2, %v159_v25, %v156_v21  ;;  %v1321_v39 = vpack.c.bf16 %v527_v35, %v526_v34  ;;  %v531_v42 = vld [vmem:[#allocation7 + $0x28] sm:$0xff]  ;;  %v184_v46 = vld [vmem:[#allocation5 + $0x78] sm:$0xff]  ;;  %v133_v47 = vmul.f32 0.2, %v1655_v38  ;;  %vm129_vm5 = vcmp.gt.f32.partialorder %v1655_v38, 0.0  ;;  %v532_v49 = vld [vmem:[#allocation7 + $0x30] sm:$0xff] }
  0x40   :  { %1029 = vmatprep.mubr.msk.f32.mxu0 %vm1640_vm3, %v164_v26  ;;  %v1329_v48 = vpack.c.bf16 %v531_v42, %v530_v41  ;;  %v533_v50 = vld [vmem:[#allocation7 + $0x38] sm:$0xff]  ;;  %v1253_v51 = vpack.c.bf16 %v184_v46, %v183_v45  ;;  %v1662_v52 = vsel %vm128_vm4, %v1653_v33, %v132_v44  ;;  %v140_v54 = vld [vmem:[#allocation5 + $0x80] sm:$0xff]  ;;  %v141_v55 = vld [vmem:[#allocation5 + $0x88] sm:$0xff]  ;;  %vm1674_vm6 = vcmp.ne.s32.totalorder %v89_v62, 0 }
  0x41   :  { %1322 = vmatprep.subr.bf16.mxu1 %v1321_v39  ;;  %v1666_v56 = vsel %vm129_vm5, %v1655_v38, %v133_v47  ;;  %v1333_v57 = vpack.c.bf16 %v533_v50, %v532_v49  ;;  %v157_v58 = vrot.slane %v1662_v52, 7  ;;  %v534_v59 = vld [vmem:[#allocation7 + $0x40] sm:$0xff]  ;;  %v535_v60 = vld [vmem:[#allocation7 + $0x48] sm:$0xff]  ;;  %v1257_v61 = vpack.c.bf16 %v141_v55, %v140_v54  ;;  %v142_v0 = vld [vmem:[#allocation5 + $0x90] sm:$0xff] }
  0x42   :  { %1236 = vmatpush3.bf16.msra.mxu0 %v1233_v10  ;;  %1324 = vmatpush3.bf16.msra.mxu1 %v1321_v39  ;;  %v158_v63 = vrot.slane %v1666_v56, 7  ;;  %v143_v1 = vld [vmem:[#allocation5 + $0x98] sm:$0xff]  ;;  %v1337_v2 = vpack.c.bf16 %v535_v60, %v534_v59  ;;  %v144_v8 = vld [vmem:[#allocation5 + $0xa0] sm:$0xff]  ;;  %v145_v9 = vld [vmem:[#allocation5 + $0xa8] sm:$0xff]  ;;  %v356_v41 = vrot.slane %v1662_v52, 1  ;;  %v68_v60 = vadd.s32 8, %v1621_v6 }
  0x43   :  { %1238 = vmatprep.subr.bf16.mxu0 %v1237_v19  ;;  %1326 = vmatprep.subr.bf16.mxu1 %v1325_v40  ;;  %v163_v3 = vsel %vm160_vm2, %v156_v21, %v157_v58  ;;  %v1261_v4 = vpack.c.bf16 %v143_v1, %v142_v0  ;;  %v1265_v13 = vpack.c.bf16 %v145_v9, %v144_v8  ;;  %v146_v14 = vld [vmem:[#allocation5 + $0xb0] sm:$0xff]  ;;  %v147_v15 = vld [vmem:[#allocation5 + $0xb8] sm:$0xff]  ;;  %v148_v17 = vld [vmem:[#allocation5 + $0xc0] sm:$0xff]  ;;  %v357_v62 = vrot.slane %v1666_v56, 1 }
  0x44   :  { %v162_v7 = vsel %vm160_vm2, %v157_v58, %v158_v63  ;;  %v161_v10 = vsel %vm160_vm2, %v158_v63, %v159_v25  ;;  %v1269_v16 = vpack.c.bf16 %v147_v15, %v146_v14  ;;  %v150_v22 = vld [vmem:[#allocation5 + $0xd0] sm:$0xff]  ;;  %v151_v23 = vld [vmem:[#allocation5 + $0xd8] sm:$0xff]  ;;  %v152_v26 = vld [vmem:[#allocation5 + $0xe0] sm:$0xff]  ;;  %v82_v63 = vand.u32 15, %v68_v60 }
  0x45   :  { %v1277_v25 = vpack.c.bf16 %v151_v23, %v150_v22  ;;  %v154_v29 = vld [vmem:[#allocation5 + $0xf0] sm:$0xff]  ;;  %v155_v30 = vld [vmem:[#allocation5 + $0xf8] sm:$0xff]  ;;  %v369_v32 = vld [vmem:[#allocation5 + $0x100] sm:$0xff]  ;;  %v70_v0 = vadd.s32 24, %v1621_v6  ;;  %v358_v1 = vrot.slane %v1636_v20, 1 }
  0x46   :  { %1240 = vmatpush3.bf16.msra.mxu0 %v1237_v19  ;;  %1328 = vmatpush3.bf16.msra.mxu1 %v1325_v40  ;;  %v149_v19 = vld [vmem:[#allocation5 + $0xc8] sm:$0xff]  ;;  %v371_v36 = vld [vmem:[#allocation5 + $0x110] sm:$0xff]  ;;  %v372_v37 = vld [vmem:[#allocation5 + $0x118] sm:$0xff]  ;;  %v355_v40 = vrot.slane %v1633_v18, 1  ;;  %vm1699_vm8 = vcmp.ne.s32.totalorder %v82_v63, 15 }
  0x47   :  { %1242 = vmatprep.subr.bf16.mxu0 %v1241_v27  ;;  %1330 = vmatprep.subr.bf16.mxu1 %v1329_v48  ;;  %v1273_v21 = vpack.c.bf16 %v149_v19, %v148_v17  ;;  %v370_v34 = vld [vmem:[#allocation5 + $0x108] sm:$0xff]  ;;  %v1293_v39 = vpack.c.bf16 %v372_v37, %v371_v36  ;;  %v373_v42 = vld [vmem:[#allocation5 + $0x120] sm:$0xff]  ;;  %v375_v46 = vld [vmem:[#allocation5 + $0x130] sm:$0xff] }
  0x48   :  { %v1289_v35 = vpack.c.bf16 %v370_v34, %v369_v32  ;;  %v362_v45 = vsel %vm359_vm7, %v355_v40, %v356_v41  ;;  %v376_v47 = vld [vmem:[#allocation5 + $0x138] sm:$0xff]  ;;  %v378_v49 = vld [vmem:[#allocation5 + $0x148] sm:$0xff]  ;;  %v381_v54 = vld [vmem:[#allocation5 + $0x160] sm:$0xff] }
  0x49   :  { %v382_v55 = vld [vmem:[#allocation5 + $0x168] sm:$0xff]  ;;  %v383_v58 = vld [vmem:[#allocation5 + $0x170] sm:$0xff]  ;;  %v384_v59 = vld [vmem:[#allocation5 + $0x178] sm:$0xff] }
  0x4a   :  { %1244 = vmatpush3.bf16.msra.mxu0 %v1241_v27  ;;  %1332 = vmatpush3.bf16.msra.mxu1 %v1329_v48  ;;  %v153_v27 = vld [vmem:[#allocation5 + $0xe8] sm:$0xff]  ;;  %v377_v48 = vld [vmem:[#allocation5 + $0x140] sm:$0xff]  ;;  %v536_v8 = vld [vmem:[#allocation7 + $0x50] sm:$0xff] }
  0x4b   :  { %1246 = vmatprep.subr.bf16.mxu0 %v1245_v31  ;;  %1334 = vmatprep.subr.bf16.mxu1 %v1333_v57  ;;  %v1281_v28 = vpack.c.bf16 %v153_v27, %v152_v26  ;;  %v1305_v50 = vpack.c.bf16 %v378_v49, %v377_v48  ;;  %v537_v9 = vld [vmem:[#allocation7 + $0x58] sm:$0xff]  ;;  %v539_v14 = vld [vmem:[#allocation7 + $0x68] sm:$0xff] }
  0x4c   :  { %v541_v17 = vld [vmem:[#allocation7 + $0x78] sm:$0xff]  ;;  %v499_v22 = vld [vmem:[#allocation7 + $0x88] sm:$0xff] }
  0x4d   :  { %v501_v48 = vld [vmem:[#allocation7 + $0x98] sm:$0xff] }
  0x4e   :  { %1248 = vmatpush3.bf16.msra.mxu0 %v1245_v31  ;;  %1336 = vmatpush3.bf16.msra.mxu1 %v1333_v57  ;;  %v1285_v31 = vpack.c.bf16 %v155_v30, %v154_v29  ;;  %v1313_v57 = vpack.c.bf16 %v382_v55, %v381_v54 }
  0x4f   :  { %1250 = vmatprep.subr.bf16.mxu0 %v1249_v43  ;;  %1338 = vmatprep.subr.bf16.mxu1 %v1337_v2 }
  0x52   :  { %1252 = vmatpush3.bf16.msra.mxu0 %v1249_v43  ;;  %1340 = vmatpush3.bf16.msra.mxu1 %v1337_v2  ;;  %v374_v43 = vld [vmem:[#allocation5 + $0x128] sm:$0xff] }
  0x53   :  { %1254 = vmatprep.subr.bf16.mxu0 %v1253_v51  ;;  %v1297_v44 = vpack.c.bf16 %v374_v43, %v373_v42 }
  0x56   :  { %1256 = vmatpush3.bf16.msra.mxu0 %v1253_v51  ;;  %v379_v51 = vld [vmem:[#allocation5 + $0x150] sm:$0xff] }
  0x57   :  { %1258 = vmatprep.subr.bf16.mxu0 %v1257_v61 }
  0x59   :  { %1030 = vmatmul.mubr.f32.vlgmr.msra.gmra.mrb[0].mxu0 %v163_v3  ;;  %v361_v3 = vsel %vm359_vm7, %v356_v41, %v357_v62 }
  0x5a   :  { %1260 = vmatpush3.bf16.msra.mxu0 %v1257_v61  ;;  %1032 = vmatprep.mubr.msk.f32.mxu0 %vm1674_vm6, %v162_v7  ;;  %v1317_v61 = vpack.c.bf16 %v384_v59, %v383_v58  ;;  %v360_v7 = vsel %vm359_vm7, %v357_v62, %v358_v1  ;;  %v503_v62 = vld [vmem:[#allocation7 + $0xa8] sm:$0xff] }
  0x5b   :  { %1262 = vmatprep.subr.bf16.mxu0 %v1261_v4 }
  0x5d   :  { %1033 = vmatmul.mubr.f32.gmra.mrb[2].mxu0 %v161_v10  ;;  %v1341_v10 = vpack.c.bf16 %v537_v9, %v536_v8  ;;  %v508_v8 = vld [vmem:[#allocation7 + $0xd0] sm:$0xff]  ;;  %v509_v9 = vld [vmem:[#allocation7 + $0xd8] sm:$0xff] }
  0x5e   :  { %1264 = vmatpush3.bf16.msra.mxu0 %v1261_v4  ;;  %1067 = vmatprep.mubr.f32.mxu0 %v1633_v18  ;;  %v1301_v18 = vpack.c.bf16 %v376_v47, %v375_v46  ;;  %v96_v4 = vand.u32 15, %v70_v0  ;;  %v1373_v5 = vpack.c.bf16 %v509_v9, %v508_v8 }
  0x5f   :  { %1266 = vmatprep.subr.bf16.mxu0 %v1265_v13  ;;  %1342 = vmatprep.subr.bf16.mxu1 %v1341_v10 }
  0x60   :  { %vm1709_vm9 = vcmp.ne.s32.totalorder %v96_v4, 15  ;;  %1344 = vmatpush3.bf16.msra.mxu1 %v1341_v10  ;;  %v510_v10 = vld [vmem:[#allocation7 + $0xe0] sm:$0xff] }
  0x62   :  { %1268 = vmatpush3.bf16.msra.mxu0 %v1265_v13  ;;  %v538_v13 = vld [vmem:[#allocation7 + $0x60] sm:$0xff] }
  0x63   :  { %1270 = vmatprep.subr.bf16.mxu0 %v1269_v16  ;;  %v1345_v15 = vpack.c.bf16 %v539_v14, %v538_v13  ;;  %v511_v13 = vld [vmem:[#allocation7 + $0xe8] sm:$0xff] }
  0x64   :  { %v1377_v14 = vpack.c.bf16 %v511_v13, %v510_v10 }
  0x65   :  { %1346 = vmatprep.subr.bf16.mxu1 %v1345_v15 }
  0x66   :  { %1272 = vmatpush3.bf16.msra.mxu0 %v1269_v16  ;;  %1348 = vmatpush3.bf16.msra.mxu1 %v1345_v15  ;;  %v540_v16 = vld [vmem:[#allocation7 + $0x70] sm:$0xff] }
  0x67   :  { %1274 = vmatprep.subr.bf16.mxu0 %v1273_v21  ;;  %v1349_v19 = vpack.c.bf16 %v541_v17, %v540_v16  ;;  %v512_v15 = vld [vmem:[#allocation7 + $0xf0] sm:$0xff]  ;;  %v513_v16 = vld [vmem:[#allocation7 + $0xf8] sm:$0xff] }
  0x68   :  { %v1381_v17 = vpack.c.bf16 %v513_v16, %v512_v15 }
  0x69   :  { %1350 = vmatprep.subr.bf16.mxu1 %v1349_v19 }
  0x6a   :  { %1276 = vmatpush3.bf16.msra.mxu0 %v1273_v21  ;;  %1352 = vmatpush3.bf16.msra.mxu1 %v1349_v19  ;;  %v498_v21 = vld [vmem:[#allocation7 + $0x80] sm:$0xff] }
  0x6b   :  { %1278 = vmatprep.subr.bf16.mxu0 %v1277_v25  ;;  %v1353_v23 = vpack.c.bf16 %v499_v22, %v498_v21  ;;  %v725_v19 = vld [vmem:[#allocation7 + $0x100] sm:$0xff]  ;;  %v726_v21 = vld [vmem:[#allocation7 + $0x108] sm:$0xff] }
  0x6c   :  { %v1385_v22 = vpack.c.bf16 %v726_v21, %v725_v19 }
  0x6d   :  { %1354 = vmatprep.subr.bf16.mxu1 %v1353_v23 }
  0x6e   :  { %1280 = vmatpush3.bf16.msra.mxu0 %v1277_v25  ;;  %v871_v25 = vld [vmem:[%s1790_s2] ss:$0 sm:$0xff] }
  0x6f   :  { %1282 = vmatprep.subr.bf16.mxu0 %v1281_v28 }
  0x72   :  { %1284 = vmatpush3.bf16.msra.mxu0 %v1281_v28 }
  0x73   :  { %1286 = vmatprep.subr.bf16.mxu0 %v1285_v31 }
  0x76   :  { %1288 = vmatpush3.bf16.msra.mxu0 %v1285_v31 }
  0x77   :  { %1290 = vmatprep.subr.bf16.mxu0 %v1289_v35 }
  0x79   :  { %1068 = vmatmul.mubr.f32.vlgmr.msra.gmra.mrb[0].mxu0 %v1662_v52  ;;  %v380_v52 = vld [vmem:[#allocation5 + $0x158] sm:$0xff] }
  0x7a   :  { %1292 = vmatpush3.bf16.msra.mxu0 %v1289_v35  ;;  %1070 = vmatprep.mubr.f32.mxu0 %v1666_v56  ;;  %v1309_v53 = vpack.c.bf16 %v380_v52, %v379_v51 }
  0x7b   :  { %1294 = vmatprep.subr.bf16.mxu0 %v1293_v39 }
  0x7d   :  { %1071 = vmatmul.mubr.f32.gmra.mrb[2].mxu0 %v1636_v20  ;;  %v363_v20 = vsel %vm359_vm7, %v358_v1, %v355_v40  ;;  %v504_v1 = vld [vmem:[#allocation7 + $0xb0] sm:$0xff] }
  0x7e   :  { %1296 = vmatpush3.bf16.msra.mxu0 %v1293_v39  ;;  %1105 = vmatprep.mubr.f32.mxu0 %v362_v45 }
  0x7f   :  { %1298 = vmatprep.subr.bf16.mxu0 %v1297_v44 }
  0x82   :  { %1300 = vmatpush3.bf16.msra.mxu0 %v1297_v44 }
  0x83   :  { %1302 = vmatprep.subr.bf16.mxu0 %v1301_v18 }
  0x86   :  { %1304 = vmatpush3.bf16.msra.mxu0 %v1301_v18  ;;  %v500_v18 = vld [vmem:[#allocation7 + $0x90] sm:$0xff] }
  0x87   :  { %1306 = vmatprep.subr.bf16.mxu0 %v1305_v50 }
  0x8a   :  { %1308 = vmatpush3.bf16.msra.mxu0 %v1305_v50 }
  0x8b   :  { %1310 = vmatprep.subr.bf16.mxu0 %v1309_v53 }
  0x8e   :  { %1312 = vmatpush3.bf16.msra.mxu0 %v1309_v53 }
  0x8f   :  { %1314 = vmatprep.subr.bf16.mxu0 %v1313_v57 }
  0x92   :  { %1316 = vmatpush3.bf16.msra.mxu0 %v1313_v57  ;;  %v1357_v57 = vpack.c.bf16 %v501_v48, %v500_v18 }
  0x93   :  { %1318 = vmatprep.subr.bf16.mxu0 %v1317_v61 }
  0x96   :  { %1320 = vmatpush3.bf16.msra.mxu0 %v1317_v61  ;;  %v502_v61 = vld [vmem:[#allocation7 + $0xa0] sm:$0xff] }
  0x97   :  { %v1361_v24 = vpack.c.bf16 %v503_v62, %v502_v61 }
  0x99   :  { %1106 = vmatmul.mubr.msk.f32.vlgmr.msra.gmra.mrb[0].mxu0 %vm1699_vm8, %v361_v3  ;;  %v505_v3 = vld [vmem:[#allocation7 + $0xb8] sm:$0xff] }
  0x9a   :  { %1108 = vmatprep.mubr.f32.mxu0 %v360_v7  ;;  %v1365_v4 = vpack.c.bf16 %v505_v3, %v504_v1  ;;  %v506_v7 = vld [vmem:[#allocation7 + $0xc0] sm:$0xff] }
  0x9d   :  { %1109 = vmatmul.mubr.msk.f32.gmra.mrb[2].mxu0 %vm1709_vm9, %v363_v20  ;;  %v507_v20 = vld [vmem:[#allocation7 + $0xc8] sm:$0xff] }
  0x9e   :  { %v1369_v6 = vpack.c.bf16 %v507_v20, %v506_v7 }
 0x16c   :  { %v1107_v26 = vpop.f32.mrb[0].mxu0 }
 0x16d   :  { %v482_v27 = vadd.f32 %v1107_v26, %v871_v25  ;;  %v451_v28 = vpop.f32.mrb[1].mxu0 }
 0x16e   :  { %v481_v29 = vadd.f32 %v871_v25, %v451_v28  ;;  %v730_v28 = vld [vmem:[#allocation7 + $0x128] sm:$0xff] }
 0x16f   :  { %vm486_vm10 = vcmp.gt.f32.partialorder %v482_v27, 0.0  ;;  %v490_v30 = vmul.f32 0.2, %v482_v27 }
 0x170   :  { %vm485_vm11 = vcmp.gt.f32.partialorder %v481_v29, 0.0  ;;  %v489_v31 = vmul.f32 0.2, %v481_v29  ;;  %v1110_v32 = vpop.f32.mrb[2].mxu0 }
 0x171   :  { %v1720_v34 = vsel %vm486_vm10, %v482_v27, %v490_v30  ;;  %v484_v35 = vadd.f32 %v1110_v32, %v871_v25  ;;  %v461_v36 = vpop.f32.mrb[3].mxu0  ;;  %v729_v27 = vld [vmem:[#allocation7 + $0x120] sm:$0xff]  ;;  %v731_v30 = vld [vmem:[#allocation7 + $0x130] sm:$0xff] }
 0x172   :  { %v493_v37 = vsel %vm485_vm11, %v481_v29, %v489_v31  ;;  %v483_v39 = vadd.f32 %v871_v25, %v461_v36  ;;  %v515_v40 = vrot.slane %v1720_v34, 7  ;;  %v713_v41 = vrot.slane %v1720_v34, 1  ;;  %v728_v25 = vld [vmem:[#allocation7 + $0x118] sm:$0xff]  ;;  %v734_v36 = vld [vmem:[#allocation7 + $0x148] sm:$0xff] }
 0x173   :  { %vm488_vm12 = vcmp.gt.f32.partialorder %v484_v35, 0.0  ;;  %v492_v42 = vmul.f32 0.2, %v484_v35  ;;  %v514_v43 = vrot.slane %v493_v37, 7  ;;  %v712_v44 = vrot.slane %v493_v37, 1  ;;  %v732_v31 = vld [vmem:[#allocation7 + $0x138] sm:$0xff] }
 0x174   :  { %vm487_vm13 = vcmp.gt.f32.partialorder %v483_v39, 0.0  ;;  %v491_v45 = vmul.f32 0.2, %v483_v39  ;;  %v1393_v29 = vpack.c.bf16 %v730_v28, %v729_v27  ;;  %v1397_v32 = vpack.c.bf16 %v732_v31, %v731_v30 }
 0x175   :  { %v1724_v46 = vsel %vm488_vm12, %v484_v35, %v492_v42  ;;  %v520_v47 = vsel %vm160_vm2, %v514_v43, %v515_v40  ;;  %v1730_v49 = vsel %vm359_vm7, %v712_v44, %v713_v41  ;;  %v733_v35 = vld [vmem:[#allocation7 + $0x140] sm:$0xff]  ;;  %v738_v42 = vld [vmem:[#allocation7 + $0x168] sm:$0xff] }
 0x176   :  { %v495_v50 = vsel %vm487_vm13, %v483_v39, %v491_v45  ;;  %v517_v51 = vrot.slane %v1724_v46, 7  ;;  %v715_v52 = vrot.slane %v1724_v46, 1  ;;  %v735_v39 = vld [vmem:[#allocation7 + $0x150] sm:$0xff]  ;;  %v740_v45 = vld [vmem:[#allocation7 + $0x178] sm:$0xff] }
 0x177   :  { %v516_v53 = vrot.slane %v495_v50, 7  ;;  %v714_v54 = vrot.slane %v495_v50, 1 }
 0x178   :  { %v521_v55 = vsel %vm160_vm2, %v517_v51, %v514_v43  ;;  %v1738_v58 = vsel %vm359_vm7, %v715_v52, %v712_v44  ;;  %v739_v44 = vld [vmem:[#allocation7 + $0x170] sm:$0xff] }
 0x179   :  { %1143 = vmatprep.mubr.msk.f32.mxu1 %vm1640_vm3, %v521_v55  ;;  %v519_v59 = vsel %vm160_vm2, %v515_v40, %v516_v53  ;;  %v518_v60 = vsel %vm160_vm2, %v516_v53, %v517_v51  ;;  %v1748_v63 = vsel %vm359_vm7, %v713_v41, %v714_v54  ;;  %v1752_v0 = vsel %vm359_vm7, %v714_v54, %v715_v52  ;;  %v737_v41 = vld [vmem:[#allocation7 + $0x160] sm:$0xff] }
 0x17a   :  { %1144 = vmatmul.mubr.f32.vlgmr.msra.gmra.mrb[0].mxu1 %v520_v47  ;;  %v1409_v43 = vpack.c.bf16 %v738_v42, %v737_v41  ;;  %v876_v47 = vld [vmem:[%s1792_s4] ss:$0 sm:$0xff]  ;;  %s1505_s4 = scalar_lea.vmem %s855_s9, 512 }
 0x17b   :  { %1356 = vmatpush3.bf16.msra.mxu1 %v1353_v23  ;;  %1146 = vmatprep.mubr.msk.f32.mxu1 %vm1674_vm6, %v519_v59  ;;  %v727_v23 = vld [vmem:[#allocation7 + $0x110] sm:$0xff]  ;;  %p1506_p10 = scmp.ne.s32.totalorder %s855_s9, %s1505_s4  ;;  %p1511_p12 = scmp.lt.s32.totalorder %s1505_s4, %s1505_s4 }
 0x17c   :  { %1358 = vmatprep.subr.bf16.mxu1 %v1357_v57  ;;  %v1389_v26 = vpack.c.bf16 %v728_v25, %v727_v23 }
 0x17d   :  { %p1512_p13 = por %p1511_p12, %p1510_p11 }
 0x17e   :  { %1147 = vmatmul.mubr.f32.gmra.mrb[2].mxu1 %v518_v60 }
 0x17f   :  { %1360 = vmatpush3.bf16.msra.mxu1 %v1357_v57  ;;  %1181 = vmatprep.mubr.f32.mxu1 %v493_v37  ;;  %v1401_v37 = vpack.c.bf16 %v734_v36, %v733_v35  ;;  %p1513_p0 = pnand %p1512_p13, %p1506_p10 }
 0x180   :  { %1362 = vmatprep.subr.bf16.mxu1 %v1361_v24 }
 0x183   :  { %1364 = vmatpush3.bf16.msra.mxu1 %v1361_v24 }
 0x184   :  { %1366 = vmatprep.subr.bf16.mxu1 %v1365_v4 }
 0x187   :  { %1368 = vmatpush3.bf16.msra.mxu1 %v1365_v4 }
 0x188   :  { %1370 = vmatprep.subr.bf16.mxu1 %v1369_v6 }
 0x18b   :  { %1372 = vmatpush3.bf16.msra.mxu1 %v1369_v6 }
 0x18c   :  { %1374 = vmatprep.subr.bf16.mxu1 %v1373_v5 }
 0x18f   :  { %1376 = vmatpush3.bf16.msra.mxu1 %v1373_v5 }
 0x190   :  { %1378 = vmatprep.subr.bf16.mxu1 %v1377_v14 }
 0x193   :  { %1380 = vmatpush3.bf16.msra.mxu1 %v1377_v14 }
 0x194   :  { %1382 = vmatprep.subr.bf16.mxu1 %v1381_v17 }
 0x197   :  { %1384 = vmatpush3.bf16.msra.mxu1 %v1381_v17 }
 0x198   :  { %1386 = vmatprep.subr.bf16.mxu1 %v1385_v22 }
 0x19a   :  { %1182 = vmatmul.mubr.f32.vlgmr.msra.gmra.mrb[0].mxu1 %v1720_v34  ;;  %v736_v34 = vld [vmem:[#allocation7 + $0x158] sm:$0xff] }
 0x19b   :  { %1184 = vmatprep.mubr.f32.mxu1 %v495_v50  ;;  %1388 = vmatpush3.bf16.msra.mxu1 %v1385_v22  ;;  %v1405_v40 = vpack.c.bf16 %v736_v34, %v735_v39 }
 0x19c   :  { %1390 = vmatprep.subr.bf16.mxu1 %v1389_v26 }
 0x19e   :  { %1185 = vmatmul.mubr.f32.gmra.mrb[2].mxu1 %v1724_v46  ;;  %v1413_v46 = vpack.c.bf16 %v740_v45, %v739_v44 }
 0x19f   :  { %1392 = vmatpush3.bf16.msra.mxu1 %v1389_v26  ;;  %1219 = vmatprep.mubr.f32.mxu1 %v1730_v49 }
 0x1a0   :  { %1394 = vmatprep.subr.bf16.mxu1 %v1393_v29 }
 0x1a3   :  { %1396 = vmatpush3.bf16.msra.mxu1 %v1393_v29 }
 0x1a4   :  { %1398 = vmatprep.subr.bf16.mxu1 %v1397_v32 }
 0x1a7   :  { %1400 = vmatpush3.bf16.msra.mxu1 %v1397_v32 }
 0x1a8   :  { %1402 = vmatprep.subr.bf16.mxu1 %v1401_v37 }
 0x1ab   :  { %1404 = vmatpush3.bf16.msra.mxu1 %v1401_v37 }
 0x1ac   :  { %1406 = vmatprep.subr.bf16.mxu1 %v1405_v40 }
 0x1af   :  { %1408 = vmatpush3.bf16.msra.mxu1 %v1405_v40 }
 0x1b0   :  { %1410 = vmatprep.subr.bf16.mxu1 %v1409_v43 }
 0x1b3   :  { %1412 = vmatpush3.bf16.msra.mxu1 %v1409_v43 }
 0x1b4   :  { %1414 = vmatprep.subr.bf16.mxu1 %v1413_v46 }
 0x1b7   :  { %1416 = vmatpush3.bf16.msra.mxu1 %v1413_v46 }
 0x1ba   :  { %1220 = vmatmul.mubr.msk.f32.vlgmr.msra.gmra.mrb[0].mxu1 %vm1699_vm8, %v1748_v63 }
 0x1bb   :  { %1222 = vmatprep.mubr.f32.mxu1 %v1752_v0 }
 0x1be   :  { %1223 = vmatmul.mubr.msk.f32.gmra.mrb[2].mxu1 %vm1709_vm9, %v1738_v58 }
 0x28d   :  { %v1221_v18 = vpop.f32.mrb[0].mxu1 }
 0x28e   :  { %v838_v48 = vadd.f32 %v1221_v18, %v876_v47  ;;  %v807_v49 = vpop.f32.mrb[1].mxu1 }
 0x28f   :  { %v837_v50 = vadd.f32 %v876_v47, %v807_v49 }
 0x290   :  { %v842_v51 = vadd.f32 %v838_v48, %v1653_v33 }
 0x291   :  { %v841_v52 = vadd.f32 %v837_v50, %v1623_v11  ;;  %v1224_v2 = vpop.f32.mrb[2].mxu1 }
 0x292   :  { %846 = vst [vmem:[#allocation8 + $0x8] sm:$0xff] %v842_v51  ;;  %v840_v53 = vadd.f32 %v1224_v2, %v876_v47  ;;  %v817_v54 = vpop.f32.mrb[3].mxu1 }
 0x293   :  { %845 = vst [vmem:[#allocation8] sm:$0xff] %v841_v52  ;;  %v839_v56 = vadd.f32 %v876_v47, %v817_v54 }
 0x294   :  { %v844_v55 = vadd.f32 %v840_v53, %v1625_v12 }
 0x295   :  { %v843_v57 = vadd.f32 %v839_v56, %v1655_v38 }
 0x296   :  { %848 = vst [vmem:[#allocation8 + $0x18] sm:$0xff] %v844_v55 }
 0x297   :  { %847 = vst [vmem:[#allocation8 + $0x10] sm:$0xff] %v843_v57 }
 0x298   :  { %1516 = shalt.err (!%p1513_p0)
}
 0x299   :  { %s1517_s12 = scalar_lea.hbm %s1793_s5, 512 }
 0x29a   :  { %p1518_p1 = scmp.ne.s32.totalorder %s1793_s5, %s1517_s12  ;;  %p1521_p2 = scmp.lt.u32.totalorder %s1517_s12, %s1793_s5 }
 0x29c   :  { %p1523_p3 = pnand %p1521_p2, %p1518_p1 }
 0x29e   :  { %1526 = shalt.err (!%p1523_p3)
}
 0x29f   :  { %860 = dma.vmem_to_hbm [thread:$0]  %s855_s9, 512, %s1793_s5, [#allocation4], %s1535_s30, %s1535_s30, %s1536_s6  }
 0x2a0   :  { %1531 = dma.done.wait [#allocation4], 512  }
 0x2a1   :  { %1532 = vsyncadd [#allocation4], 4294966784 }
 0x2a2   :  { %864 = vsyncpa [#allocation3], 1 }
 0x2a3   :  { %865 = vsyncpa [#allocation6], 1 }
 0x2a4   :  { %866 = vsyncpa [#allocation4], 1 }

</bundles_post_ra>
